<compile_context>
chip_gen: v7x
topology: tpu7x:2x2x1
jax: 0.10.0
libtpu: 0.0.40
codegen_flags: <defaults>
</compile_context>

<pallas_src>
import functools
import math

import numpy as np
import jax
import jax.numpy as jnp
from jax.experimental import pallas as pl
from jax.experimental.pallas import tpu as pltpu

LANES = 128

_ATAN_P0 = -3.33329491539e-1
_ATAN_P1 = 1.99777106478e-1
_ATAN_P2 = -1.38776856032e-1
_ATAN_P3 = 8.05374449538e-2
_TAN_PI_8 = 0.4142135623730950
_PI = math.pi
_PI_2 = math.pi / 2.0
_PI_4 = math.pi / 4.0


def _round_up(x, m):
    return ((x + m - 1) // m) * m


# ----------------------------------------------------------------------------
# In-kernel atan2 built from VPU-only ops (mul/add/div/abs/select) so it is
# guaranteed to lower on Mosaic on every jax version / TPU generation.
def _atan_01(t):
    """atan(t) for t in [0, 1], Cephes-style polynomial, max err ~2e-7 rad."""
    red = t > _TAN_PI_8
    tr_ = jnp.where(red, (t - 1.0) / (t + 1.0), t)
    z = tr_ * tr_
    p = ((_ATAN_P3 * z + _ATAN_P2) * z + _ATAN_P1) * z + _ATAN_P0
    at = p * z * tr_ + tr_
    return jnp.where(red, at + _PI_4, at)


def _atan2(y, x):
    """Elementwise atan2(y, x); matches numpy (atan2(0, 0) = 0)."""
    ax = jnp.abs(x)
    ay = jnp.abs(y)
    hi = jnp.maximum(ax, ay)
    lo = jnp.minimum(ax, ay)
    t = lo / jnp.where(hi > 0.0, hi, 1.0)      # guard 0/0 (zero-padded lanes)
    a = _atan_01(t)
    a = jnp.where(ay > ax, _PI_2 - a, a)       # octant restore
    a = jnp.where(x < 0.0, _PI - a, a)         # quadrant (sign of x)
    return jnp.where(y < 0.0, -a, a)           # half-plane (sign of y)


# ----------------------------------------------------------------------------
# Pallas kernel.
#   input  (4,  tile_rows, 128) = [a, b, c, kappa]   (lane-dense batch)
#   output (4D, tile_rows, 128) = [vert_sin_d..., vert_cos_d...,
#                                  horz_sin_d..., horz_cos_d...]
def ise_kernel(inp_ref, out_ref, *, max_degree):
    a = inp_ref[0]
    b = inp_ref[1]
    c = inp_ref[2]
    kappa = inp_ref[3]

    kappa = jnp.clip(kappa, 1.0, 20.0)
    rough = 1.0 / (kappa * kappa + 1e-8)

    phi = _atan2(b, a)                              # PhiISEHack angle
    norm2d = jnp.sqrt(a * a + b * b)
    theta = _atan2(c, norm2d)                       # ThetaISEHack angle

    c2 = c * c
    c4 = c2 * c2
    radius = jnp.sqrt(2.0 - c2)
    y_t = theta * radius

    # Degree-0 seeds (scale = 1).  Higher degrees via squaring / double-angle
    # recurrences on the VPU — EUP usage is constant in max_degree.
    gauss = jnp.exp(-0.5 * rough)                   # exp(-0.5*rough*s^2), s=1
    expc4 = jnp.exp(-c4)                            # exp(-s*c^4),          s=1
    sin_t = jnp.sin(y_t)
    cos_t = jnp.cos(y_t)
    sin_p = jnp.sin(phi)
    cos_p = jnp.cos(phi)

    D = max_degree
    odt = out_ref.dtype
    for d in range(D):                              # static unroll
        mul_t = gauss * c2                          # theta (vertical) branch
        out_ref[0 * D + d] = (mul_t * sin_t).astype(odt)
        out_ref[1 * D + d] = (mul_t * cos_t).astype(odt)
        mul_p = gauss * expc4                       # phi (horizontal) branch
        out_ref[2 * D + d] = (mul_p * sin_p).astype(odt)
        out_ref[3 * D + d] = (mul_p * cos_p).astype(odt)
        if d + 1 < D:                               # advance scale: s -> 2s
            g2 = gauss * gauss
            gauss = g2 * g2                         # s^2 quadruples -> ^4
            expc4 = expc4 * expc4                   # s doubles      -> ^2
            sin_t, cos_t = 2.0 * sin_t * cos_t, 1.0 - 2.0 * sin_t * sin_t
            sin_p, cos_p = 2.0 * sin_p * cos_p, 1.0 - 2.0 * sin_p * sin_p


# ----------------------------------------------------------------------------
def ise_forward(vec, kappa, max_degree=1, tile_rows=1024,
                out_dtype=jnp.float32, native_layout=False):
    """ISE forward.

    native_layout=False: returns (B, 4, max_degree)  (module-compatible).
    native_layout=True : returns (4, max_degree, B) lane-dense, no final
                         transpose (preferred fast path for fused consumers).
    """
    vec = jnp.asarray(vec, jnp.float32)
    kappa = jnp.asarray(kappa, jnp.float32).reshape(-1)
    B = vec.shape[0]
    D = int(max_degree)

    # Pure relayout (no elementwise pre-pass): pack raw inputs lane-dense.
    packed = jnp.concatenate([vec.T, kappa[None, :]], axis=0)       # (4, B)

    rows = max(1, pl.cdiv(B, LANES))

    # VMEM budget: double-buffered I/O (4 + 4D)*tr*128*4*2 bytes must leave
    # room for in-kernel temporaries inside the 48 MiB scoped limit
    # (<= v7x's 64 MiB per-TC VMEM).
    tr_cap = max(8, (((24 << 20) // ((4 + 4 * D) * LANES * 4 * 2)) // 8) * 8)
    tile_rows = max(8, min(int(tile_rows), tr_cap))

    steps = pl.cdiv(rows, tile_rows)
    if rows >= 16 and steps < 2:
        steps = 2        # v7x: >=2 grid steps so "parallel" uses both TCs
    tr = _round_up(pl.cdiv(rows, steps), 8)      # bounds padding waste
    Rp = steps * tr
    Bp = Rp * LANES

    packed = jnp.pad(packed, ((0, 0), (0, Bp - B))).reshape(4, Rp, LANES)

    out = pl.pallas_call(
        functools.partial(ise_kernel, max_degree=D),
        out_shape=jax.ShapeDtypeStruct((4 * D, Rp, LANES), out_dtype),
        grid=(steps,),
        in_specs=[pl.BlockSpec((4, tr, LANES), lambda i: (0, i, 0))],
        out_specs=pl.BlockSpec((4 * D, tr, LANES), lambda i: (0, i, 0)),
        compiler_params=pltpu.CompilerParams(
            dimension_semantics=("parallel",),
            vmem_limit_bytes=48 << 20),
    )(packed)

    out = out.reshape(4, D, Bp)[:, :, :B]        # (4, D, B), drop padding
    if native_layout:
        return out                               # no relayout / transpose
    return jnp.transpose(out, (2, 0, 1))         # (B, 4, D) module layout


# ----------------------------------------------------------------------------
# Pure-numpy reference mirroring the PyTorch ISE.forward exactly.
def ref_ise(vec, kappa, max_degree=1):
    vec = np.asarray(vec, np.float32)
    kappa = np.asarray(kappa, np.float32).reshape(-1, 1)
    kappa = np.clip(kappa, 1.0, 20.0)
    scales = np.array([2.0 ** i for i in range(max_degree)],
                      dtype=np.float32).reshape(1, -1)

    a, b, c = vec[:, 0:1], vec[:, 1:2], vec[:, 2:3]
    rough = 1.0 / (kappa ** 2 + 1e-8)
    gauss = np.exp(-0.5 * rough * scales ** 2)

    # PhiISEHack
    phi = np.arctan2(b, a)
    mul_p = gauss * np.exp(-scales * c ** 4)
    y_p = phi * scales
    horz = [mul_p * np.sin(y_p), mul_p * np.cos(y_p)]

    # ThetaISEHack
    norm2d = np.sqrt(a ** 2 + b ** 2)
    radius = np.sqrt(2.0 - c ** 2)
    theta = np.arctan2(c, norm2d)
    mul_t = gauss * (c ** 2)
    y_t = (theta * radius) * scales
    vert = [mul_t * np.sin(y_t), mul_t * np.cos(y_t)]

    return np.stack([vert[0], vert[1], horz[0], horz[1]], axis=1)  # (B, 4, D)


if __name__ == "__main__":
    key = jax.random.PRNGKey(0)
    kv, kk = jax.random.split(key)

    # Small module-consistent shapes: B rays with unit direction + scalar kappa.
    B = 8
    vec = jax.random.normal(kv, (B, 3), jnp.float32)
    vec = vec / jnp.linalg.norm(vec, axis=-1, keepdims=True)
    kappa = jax.random.uniform(kk, (B,), jnp.float32, minval=0.5, maxval=30.0)

    out = jax.block_until_ready(ise_forward(vec, kappa, max_degree=1))
    ref = ref_ise(np.asarray(vec), np.asarray(kappa), max_degree=1)
    np.testing.assert_allclose(np.asarray(out), ref, rtol=2e-4, atol=1e-5)

    # Kernel-native lane-dense layout (no final transpose) — preferred path.
    out_native = jax.block_until_ready(
        ise_forward(vec, kappa, max_degree=1, native_layout=True))
    np.testing.assert_allclose(np.asarray(out_native),
                               ref.transpose(1, 2, 0), rtol=2e-4, atol=1e-5)

    # Odd batch + max_degree=3: exercises multi-step grid, padding path and
    # the squaring / double-angle degree recurrences.
    kv2, kk2 = jax.random.split(jax.random.PRNGKey(1))
    B2 = 2112
    vec2 = jax.random.normal(kv2, (B2, 3), jnp.float32)
    vec2 = vec2 / jnp.linalg.norm(vec2, axis=-1, keepdims=True)
    kappa2 = jax.random.uniform(kk2, (B2,), jnp.float32, minval=0.5, maxval=30.0)
    out2 = jax.block_until_ready(ise_forward(vec2, kappa2, max_degree=3))
    ref2 = ref_ise(np.asarray(vec2), np.asarray(kappa2), max_degree=3)
    np.testing.assert_allclose(np.asarray(out2), ref2, rtol=1e-3, atol=1e-4)

    print("KERNEL_OK")
</pallas_src>

<mosaic_0001>
module attributes {stable_mosaic.version = 11 : i64} {
  func.func @ise_kernel(%arg0: i32, %arg1: memref<4x8x128xf32, #tpu.memory_space<vmem>>, %arg2: memref<4x8x128xf32, #tpu.memory_space<vmem>>) attributes {dimension_semantics = [#tpu.dimension_semantics<parallel>], iteration_bounds = array<i64: 1>, scalar_prefetch = 0 : i64, scratch_operands = 0 : i64, tpu.core_type = #tpu.core_type<tc>, window_params = [{transform_indices = @transform_0, window_bounds = array<i64: 4, 8, 128>}, {transform_indices = @transform_1, window_bounds = array<i64: 4, 8, 128>}]} {
    %c0 = arith.constant 0 : index
    %c0_0 = arith.constant 0 : index
    %c0_1 = arith.constant 0 : index
    %0 = vector.load %arg1[%c0, %c0_0, %c0_1] : memref<4x8x128xf32, #tpu.memory_space<vmem>>, vector<1x8x128xf32>
    %1 = vector.shape_cast %0 : vector<1x8x128xf32> to vector<8x128xf32>
    %c1 = arith.constant 1 : index
    %c0_2 = arith.constant 0 : index
    %c0_3 = arith.constant 0 : index
    %2 = vector.load %arg1[%c1, %c0_2, %c0_3] : memref<4x8x128xf32, #tpu.memory_space<vmem>>, vector<1x8x128xf32>
    %3 = vector.shape_cast %2 : vector<1x8x128xf32> to vector<8x128xf32>
    %c2 = arith.constant 2 : index
    %c0_4 = arith.constant 0 : index
    %c0_5 = arith.constant 0 : index
    %4 = vector.load %arg1[%c2, %c0_4, %c0_5] : memref<4x8x128xf32, #tpu.memory_space<vmem>>, vector<1x8x128xf32>
    %5 = vector.shape_cast %4 : vector<1x8x128xf32> to vector<8x128xf32>
    %c3 = arith.constant 3 : index
    %c0_6 = arith.constant 0 : index
    %c0_7 = arith.constant 0 : index
    %6 = vector.load %arg1[%c3, %c0_6, %c0_7] : memref<4x8x128xf32, #tpu.memory_space<vmem>>, vector<1x8x128xf32>
    %7 = vector.shape_cast %6 : vector<1x8x128xf32> to vector<8x128xf32>
    %cst = arith.constant 1.000000e+00 : f32
    %cst_8 = arith.constant 2.000000e+01 : f32
    %8 = vector.broadcast %cst : f32 to vector<8x128xf32>
    %9 = arith.maximumf %8, %7 : vector<8x128xf32>
    %10 = vector.broadcast %cst_8 : f32 to vector<8x128xf32>
    %11 = arith.minimumf %10, %9 : vector<8x128xf32>
    %12 = arith.mulf %11, %11 : vector<8x128xf32>
    %cst_9 = arith.constant 9.99999993E-9 : f32
    %13 = vector.broadcast %cst_9 : f32 to vector<8x128xf32>
    %14 = arith.addf %12, %13 : vector<8x128xf32>
    %cst_10 = arith.constant 1.000000e+00 : f32
    %15 = vector.broadcast %cst_10 : f32 to vector<8x128xf32>
    %16 = arith.divf %15, %14 : vector<8x128xf32>
    %17 = math.absf %1 : vector<8x128xf32>
    %18 = math.absf %3 : vector<8x128xf32>
    %19 = arith.maximumf %17, %18 : vector<8x128xf32>
    %20 = arith.minimumf %17, %18 : vector<8x128xf32>
    %cst_11 = arith.constant 0.000000e+00 : f32
    %21 = vector.broadcast %cst_11 : f32 to vector<8x128xf32>
    %22 = arith.cmpf ogt, %19, %21 : vector<8x128xf32>
    %cst_12 = arith.constant 1.000000e+00 : f32
    %23 = vector.broadcast %cst_12 : f32 to vector<8x128xf32>
    %24 = arith.select %22, %19, %23 : vector<8x128xi1>, vector<8x128xf32>
    %25 = arith.divf %20, %24 : vector<8x128xf32>
    %cst_13 = arith.constant 0.414213568 : f32
    %26 = vector.broadcast %cst_13 : f32 to vector<8x128xf32>
    %27 = arith.cmpf ogt, %25, %26 : vector<8x128xf32>
    %cst_14 = arith.constant 1.000000e+00 : f32
    %28 = vector.broadcast %cst_14 : f32 to vector<8x128xf32>
    %29 = arith.subf %25, %28 : vector<8x128xf32>
    %cst_15 = arith.constant 1.000000e+00 : f32
    %30 = vector.broadcast %cst_15 : f32 to vector<8x128xf32>
    %31 = arith.addf %25, %30 : vector<8x128xf32>
    %32 = arith.divf %29, %31 : vector<8x128xf32>
    %33 = arith.select %27, %32, %25 : vector<8x128xi1>, vector<8x128xf32>
    %34 = arith.mulf %33, %33 : vector<8x128xf32>
    %cst_16 = arith.constant 0.0805374458 : f32
    %35 = vector.broadcast %cst_16 : f32 to vector<8x128xf32>
    %36 = arith.mulf %35, %34 : vector<8x128xf32>
    %cst_17 = arith.constant -0.138776854 : f32
    %37 = vector.broadcast %cst_17 : f32 to vector<8x128xf32>
    %38 = arith.addf %36, %37 : vector<8x128xf32>
    %39 = arith.mulf %38, %34 : vector<8x128xf32>
    %cst_18 = arith.constant 0.199777111 : f32
    %40 = vector.broadcast %cst_18 : f32 to vector<8x128xf32>
    %41 = arith.addf %39, %40 : vector<8x128xf32>
    %42 = arith.mulf %41, %34 : vector<8x128xf32>
    %cst_19 = arith.constant -0.333329499 : f32
    %43 = vector.broadcast %cst_19 : f32 to vector<8x128xf32>
    %44 = arith.addf %42, %43 : vector<8x128xf32>
    %45 = arith.mulf %44, %34 : vector<8x128xf32>
    %46 = arith.mulf %45, %33 : vector<8x128xf32>
    %47 = arith.addf %46, %33 : vector<8x128xf32>
    %cst_20 = arith.constant 0.785398185 : f32
    %48 = vector.broadcast %cst_20 : f32 to vector<8x128xf32>
    %49 = arith.addf %47, %48 : vector<8x128xf32>
    %50 = arith.select %27, %49, %47 : vector<8x128xi1>, vector<8x128xf32>
    %51 = arith.cmpf ogt, %18, %17 : vector<8x128xf32>
    %cst_21 = arith.constant 1.57079637 : f32
    %52 = vector.broadcast %cst_21 : f32 to vector<8x128xf32>
    %53 = arith.subf %52, %50 : vector<8x128xf32>
    %54 = arith.select %51, %53, %50 : vector<8x128xi1>, vector<8x128xf32>
    %cst_22 = arith.constant 0.000000e+00 : f32
    %55 = vector.broadcast %cst_22 : f32 to vector<8x128xf32>
    %56 = arith.cmpf olt, %1, %55 : vector<8x128xf32>
    %cst_23 = arith.constant 3.14159274 : f32
    %57 = vector.broadcast %cst_23 : f32 to vector<8x128xf32>
    %58 = arith.subf %57, %54 : vector<8x128xf32>
    %59 = arith.select %56, %58, %54 : vector<8x128xi1>, vector<8x128xf32>
    %cst_24 = arith.constant 0.000000e+00 : f32
    %60 = vector.broadcast %cst_24 : f32 to vector<8x128xf32>
    %61 = arith.cmpf olt, %3, %60 : vector<8x128xf32>
    %cst_25 = arith.constant 0.000000e+00 : f32
    %62 = vector.broadcast %cst_25 : f32 to vector<8x128xf32>
    %63 = arith.subf %62, %59 : vector<8x128xf32>
    %64 = arith.select %61, %63, %59 : vector<8x128xi1>, vector<8x128xf32>
    %65 = arith.mulf %1, %1 : vector<8x128xf32>
    %66 = arith.mulf %3, %3 : vector<8x128xf32>
    %67 = arith.addf %65, %66 : vector<8x128xf32>
    %68 = math.sqrt %67 : vector<8x128xf32>
    %69 = math.absf %68 : vector<8x128xf32>
    %70 = math.absf %5 : vector<8x128xf32>
    %71 = arith.maximumf %69, %70 : vector<8x128xf32>
    %72 = arith.minimumf %69, %70 : vector<8x128xf32>
    %cst_26 = arith.constant 0.000000e+00 : f32
    %73 = vector.broadcast %cst_26 : f32 to vector<8x128xf32>
    %74 = arith.cmpf ogt, %71, %73 : vector<8x128xf32>
    %cst_27 = arith.constant 1.000000e+00 : f32
    %75 = vector.broadcast %cst_27 : f32 to vector<8x128xf32>
    %76 = arith.select %74, %71, %75 : vector<8x128xi1>, vector<8x128xf32>
    %77 = arith.divf %72, %76 : vector<8x128xf32>
    %cst_28 = arith.constant 0.414213568 : f32
    %78 = vector.broadcast %cst_28 : f32 to vector<8x128xf32>
    %79 = arith.cmpf ogt, %77, %78 : vector<8x128xf32>
    %cst_29 = arith.constant 1.000000e+00 : f32
    %80 = vector.broadcast %cst_29 : f32 to vector<8x128xf32>
    %81 = arith.subf %77, %80 : vector<8x128xf32>
    %cst_30 = arith.constant 1.000000e+00 : f32
    %82 = vector.broadcast %cst_30 : f32 to vector<8x128xf32>
    %83 = arith.addf %77, %82 : vector<8x128xf32>
    %84 = arith.divf %81, %83 : vector<8x128xf32>
    %85 = arith.select %79, %84, %77 : vector<8x128xi1>, vector<8x128xf32>
    %86 = arith.mulf %85, %85 : vector<8x128xf32>
    %cst_31 = arith.constant 0.0805374458 : f32
    %87 = vector.broadcast %cst_31 : f32 to vector<8x128xf32>
    %88 = arith.mulf %87, %86 : vector<8x128xf32>
    %cst_32 = arith.constant -0.138776854 : f32
    %89 = vector.broadcast %cst_32 : f32 to vector<8x128xf32>
    %90 = arith.addf %88, %89 : vector<8x128xf32>
    %91 = arith.mulf %90, %86 : vector<8x128xf32>
    %cst_33 = arith.constant 0.199777111 : f32
    %92 = vector.broadcast %cst_33 : f32 to vector<8x128xf32>
    %93 = arith.addf %91, %92 : vector<8x128xf32>
    %94 = arith.mulf %93, %86 : vector<8x128xf32>
    %cst_34 = arith.constant -0.333329499 : f32
    %95 = vector.broadcast %cst_34 : f32 to vector<8x128xf32>
    %96 = arith.addf %94, %95 : vector<8x128xf32>
    %97 = arith.mulf %96, %86 : vector<8x128xf32>
    %98 = arith.mulf %97, %85 : vector<8x128xf32>
    %99 = arith.addf %98, %85 : vector<8x128xf32>
    %cst_35 = arith.constant 0.785398185 : f32
    %100 = vector.broadcast %cst_35 : f32 to vector<8x128xf32>
    %101 = arith.addf %99, %100 : vector<8x128xf32>
    %102 = arith.select %79, %101, %99 : vector<8x128xi1>, vector<8x128xf32>
    %103 = arith.cmpf ogt, %70, %69 : vector<8x128xf32>
    %cst_36 = arith.constant 1.57079637 : f32
    %104 = vector.broadcast %cst_36 : f32 to vector<8x128xf32>
    %105 = arith.subf %104, %102 : vector<8x128xf32>
    %106 = arith.select %103, %105, %102 : vector<8x128xi1>, vector<8x128xf32>
    %cst_37 = arith.constant 0.000000e+00 : f32
    %107 = vector.broadcast %cst_37 : f32 to vector<8x128xf32>
    %108 = arith.cmpf olt, %68, %107 : vector<8x128xf32>
    %cst_38 = arith.constant 3.14159274 : f32
    %109 = vector.broadcast %cst_38 : f32 to vector<8x128xf32>
    %110 = arith.subf %109, %106 : vector<8x128xf32>
    %111 = arith.select %108, %110, %106 : vector<8x128xi1>, vector<8x128xf32>
    %cst_39 = arith.constant 0.000000e+00 : f32
    %112 = vector.broadcast %cst_39 : f32 to vector<8x128xf32>
    %113 = arith.cmpf olt, %5, %112 : vector<8x128xf32>
    %cst_40 = arith.constant 0.000000e+00 : f32
    %114 = vector.broadcast %cst_40 : f32 to vector<8x128xf32>
    %115 = arith.subf %114, %111 : vector<8x128xf32>
    %116 = arith.select %113, %115, %111 : vector<8x128xi1>, vector<8x128xf32>
    %117 = arith.mulf %5, %5 : vector<8x128xf32>
    %118 = arith.mulf %117, %117 : vector<8x128xf32>
    %cst_41 = arith.constant 2.000000e+00 : f32
    %119 = vector.broadcast %cst_41 : f32 to vector<8x128xf32>
    %120 = arith.subf %119, %117 : vector<8x128xf32>
    %121 = math.sqrt %120 : vector<8x128xf32>
    %122 = arith.mulf %116, %121 : vector<8x128xf32>
    %cst_42 = arith.constant -5.000000e-01 : f32
    %123 = vector.broadcast %cst_42 : f32 to vector<8x128xf32>
    %124 = arith.mulf %123, %16 : vector<8x128xf32>
    %125 = math.exp %124 : vector<8x128xf32>
    %cst_43 = arith.constant 0.000000e+00 : f32
    %126 = vector.broadcast %cst_43 : f32 to vector<8x128xf32>
    %127 = arith.subf %126, %118 : vector<8x128xf32>
    %128 = math.exp %127 : vector<8x128xf32>
    %129 = math.sin %122 : vector<8x128xf32>
    %130 = math.cos %122 : vector<8x128xf32>
    %131 = math.sin %64 : vector<8x128xf32>
    %132 = math.cos %64 : vector<8x128xf32>
    %133 = arith.mulf %125, %117 : vector<8x128xf32>
    %134 = arith.mulf %133, %129 : vector<8x128xf32>
    %c0_44 = arith.constant 0 : index
    %c0_45 = arith.constant 0 : index
    %c0_46 = arith.constant 0 : index
    %135 = vector.load %arg2[%c0_44, %c0_45, %c0_46] : memref<4x8x128xf32, #tpu.memory_space<vmem>>, vector<1x8x128xf32>
    %136 = vector.shape_cast %135 : vector<1x8x128xf32> to vector<8x128xf32>
    %137 = vector.shape_cast %134 : vector<8x128xf32> to vector<1x8x128xf32>
    tpu.vector_store %arg2[%c0_44, %c0_45, %c0_46], %137 {strides = array<i32>} : memref<4x8x128xf32, #tpu.memory_space<vmem>>, vector<1x8x128xf32>,
    %138 = arith.mulf %133, %130 : vector<8x128xf32>
    %c1_47 = arith.constant 1 : index
    %c0_48 = arith.constant 0 : index
    %c0_49 = arith.constant 0 : index
    %139 = vector.load %arg2[%c1_47, %c0_48, %c0_49] : memref<4x8x128xf32, #tpu.memory_space<vmem>>, vector<1x8x128xf32>
    %140 = vector.shape_cast %139 : vector<1x8x128xf32> to vector<8x128xf32>
    %141 = vector.shape_cast %138 : vector<8x128xf32> to vector<1x8x128xf32>
    tpu.vector_store %arg2[%c1_47, %c0_48, %c0_49], %141 {strides = array<i32>} : memref<4x8x128xf32, #tpu.memory_space<vmem>>, vector<1x8x128xf32>,
    %142 = arith.mulf %125, %128 : vector<8x128xf32>
    %143 = arith.mulf %142, %131 : vector<8x128xf32>
    %c2_50 = arith.constant 2 : index
    %c0_51 = arith.constant 0 : index
    %c0_52 = arith.constant 0 : index
    %144 = vector.load %arg2[%c2_50, %c0_51, %c0_52] : memref<4x8x128xf32, #tpu.memory_space<vmem>>, vector<1x8x128xf32>
    %145 = vector.shape_cast %144 : vector<1x8x128xf32> to vector<8x128xf32>
    %146 = vector.shape_cast %143 : vector<8x128xf32> to vector<1x8x128xf32>
    tpu.vector_store %arg2[%c2_50, %c0_51, %c0_52], %146 {strides = array<i32>} : memref<4x8x128xf32, #tpu.memory_space<vmem>>, vector<1x8x128xf32>,
    %147 = arith.mulf %142, %132 : vector<8x128xf32>
    %c3_53 = arith.constant 3 : index
    %c0_54 = arith.constant 0 : index
    %c0_55 = arith.constant 0 : index
    %148 = vector.load %arg2[%c3_53, %c0_54, %c0_55] : memref<4x8x128xf32, #tpu.memory_space<vmem>>, vector<1x8x128xf32>
    %149 = vector.shape_cast %148 : vector<1x8x128xf32> to vector<8x128xf32>
    %150 = vector.shape_cast %147 : vector<8x128xf32> to vector<1x8x128xf32>
    tpu.vector_store %arg2[%c3_53, %c0_54, %c0_55], %150 {strides = array<i32>} : memref<4x8x128xf32, #tpu.memory_space<vmem>>, vector<1x8x128xf32>,
    return
  }
  func.func @transform_0(%arg0: i32) -> (i32, i32, i32) {
    %c0_i32 = arith.constant 0 : i32
    %c0_i32_0 = arith.constant 0 : i32
    %c0_i32_1 = arith.constant 0 : i32
    return %c0_i32, %arg0, %c0_i32_0 : i32, i32, i32
  }
  func.func @transform_1(%arg0: i32) -> (i32, i32, i32) {
    %c0_i32 = arith.constant 0 : i32
    %c0_i32_0 = arith.constant 0 : i32
    %c0_i32_1 = arith.constant 0 : i32
    return %c0_i32, %arg0, %c0_i32_0 : i32, i32, i32
  }
}

</mosaic_0001>

<bundles_post_ra>
// kernel: tpu_custom_call.1
= control target key start
LH: loop header
LB: loop body
LE: loop exit
PB: predicated region body
PF: predicated region fallthrough
CT: control target
= control target key end

     0   :  { %6 = vsyncpa [#allocation3], 0  ;;  %s869_s0 = inlined_call_operand.hbm [shape: f32[4,8,128], index: 0, kind: input, shape index: {}]   ;;  %s870_s1 = inlined_call_operand.hbm [shape: f32[4,8,128], index: 1, kind: output, shape index: {}]  }
   0x1   :  { %7 = vsyncpa [#allocation4], 0  ;;  %s687_s6 = smov [#allocation2]   ;;  %s639_s10 = scalar_lea.hbm %s869_s0, 512 }
   0x2   :  { %s13_s7 = sshll.u32 %s687_s6, 4  ;;  %p640_p0 = scmp.ne.s32.totalorder %s869_s0, %s639_s10  ;;  %s14_s7 = int_to_ptr.vmem [resolvable:$true] %s13_s7 }
   0x3   :  { %p643_p1 = scmp.lt.u32.totalorder %s639_s10, %s869_s0 }
   0x5   :  { %p645_p2 = pnand %p643_p1, %p640_p0 }
   0x7   :  { %648 = shalt.err (!%p645_p2)
}
   0x8   :  { %s649_s15 = scalar_lea.vmem %s14_s7, 512  ;;  %p654_p4 = scmp.lt.s32.totalorder %s14_s7, %s14_s7 }
   0x9   :  { %p650_p3 = scmp.ne.s32.totalorder %s14_s7, %s649_s15  ;;  %p655_p5 = scmp.lt.s32.totalorder %s649_s15, %s649_s15 }
   0xb   :  { %p656_p6 = por %p655_p5, %p654_p4 }
   0xd   :  { %p657_p7 = pnand %p656_p6, %p650_p3 }
   0xf   :  { %660 = shalt.err (!%p657_p7)
}
  0x10   :  { %s688_s16 = smov 128   ;;  %s689_s17 = smov 8  }
  0x11   :  { %19 = dma.hbm_to_vmem [thread:$0]  %s869_s0, 512, %s14_s7, [#allocation3], %s688_s16, %s688_s16, %s689_s17  }
  0x12   :  { %683 = dma.done.wait [#allocation3], 512  }
  0x13   :  { %684 = vsyncadd [#allocation3], 4294966784  ;;  %v722_v0 = vld [vmem:[#allocation2] sm:$0xff]  ;;  %v724_v1 = vld [vmem:[#allocation2 + $0x8] sm:$0xff]  ;;  %s696_s0 = smov [#allocation5]  }
  0x14   :  { %v71_v2 = vmul.f32 %v722_v0, %v722_v0  ;;  %v72_v3 = vmul.f32 %v724_v1, %v724_v1  ;;  %v731_v4 = vand.u32 2147483647, %v722_v0  ;;  %v734_v5 = vand.u32 2147483647, %v724_v1  ;;  %v738_v10 = vld [vmem:[#allocation2 + $0x10] sm:$0xff]  ;;  %s565_s20 = sshll.u32 %s696_s0, 4  ;;  %s566_s20 = int_to_ptr.vmem [resolvable:$true] %s565_s20 }
  0x15   :  { %v743_v15 = vand.u32 2147483647, %v738_v10  ;;  %v758_v43 = vmul.f32 %v738_v10, %v738_v10  ;;  %vm65_vm7 = vcmp.lt.f32.partialorder %v722_v0, 0.0  ;;  %vm68_vm8 = vcmp.lt.f32.partialorder %v724_v1, 0.0  ;;  %s661_s21 = scalar_lea.vmem %s566_s20, 512  ;;  %p666_p9 = scmp.lt.s32.totalorder %s566_s20, %s566_s20 }
  0x16   :  { %v73_v6 = vadd.f32 %v72_v3, %v71_v2  ;;  %v38_v7 = vmax.f32 %v731_v4, %v734_v5  ;;  %v39_v13 = vmin.f32 %v731_v4, %v734_v5  ;;  %vm62_vm6 = vcmp.gt.f32.partialorder %v734_v5, %v731_v4  ;;  %p662_p8 = scmp.ne.s32.totalorder %s566_s20, %s661_s21  ;;  %p667_p10 = scmp.lt.s32.totalorder %s661_s21, %s661_s21 }
  0x17   :  { %v118_v48 = vsub.f32 2.0, %v758_v43  ;;  %vm113_vm14 = vcmp.lt.f32.partialorder %v738_v10, 0.0 }
  0x18   :  { %613 = vrsqrt.f32 %v73_v6  ;;  %vm40_vm0 = vcmp.gt.f32.partialorder %v38_v7, 0.0  ;;  %vm76_vm1 = vcmp.eq.f32.partialorder %v73_v6, inf  ;;  %v79_v11 = vand.u32 2147483648, %v73_v6  ;;  %p668_p11 = por %p667_p10, %p666_p9 }
  0x19   :  { %v41_v8 = vsel %vm40_vm0, %v38_v7, 1.0  ;;  %vm78_vm2 = vcmp.eq.f32.partialorder %v73_v6, 0.0  ;;  %vm121_vm10 = vcmp.eq.f32.partialorder %v118_v48, inf  ;;  %vm123_vm12 = vcmp.eq.f32.partialorder %v118_v48, 0.0 }
  0x1a   :  { %615 = vrcp.f32 %v41_v8  ;;  %p669_p12 = pnand %p668_p11, %p662_p8 }
  0x22   :  { %v614_v9 = vpop.eup %613 }
  0x23   :  { %v75_v12 = vmul.f32 %v614_v9, %v73_v6 }
  0x24   :  { %v616_v16 = vpop.eup %615 }
  0x25   :  { %v77_v14 = vsel %vm76_vm1, %v73_v6, %v75_v12  ;;  %v43_v19 = vmul.f32 %v616_v16, %v39_v13  ;;  %v124_v13 = vand.u32 2147483648, %v118_v48 }
  0x26   :  { %v745_v17 = vsel %vm78_vm2, %v79_v11, %v77_v14 }
  0x27   :  { %v748_v18 = vand.u32 2147483647, %v745_v17  ;;  %v46_v21 = vadd.f32 1.0, %v43_v19  ;;  %v577_v24 = vadd.f32 -1.0, %v43_v19  ;;  %vm44_vm4 = vcmp.gt.f32.partialorder %v43_v19, 0.41421357 }
  0x28   :  { %vm110_vm11 = vcmp.lt.f32.partialorder %v745_v17, 0.0 }
  0x29   :  { %v83_v20 = vmax.f32 %v748_v18, %v743_v15  ;;  %v84_v23 = vmin.f32 %v748_v18, %v743_v15  ;;  %vm107_vm9 = vcmp.gt.f32.partialorder %v743_v15, %v748_v18 }
  0x2b   :  { %vm85_vm3 = vcmp.gt.f32.partialorder %v83_v20, 0.0 }
  0x2c   :  { %v86_v22 = vsel %vm85_vm3, %v83_v20, 1.0 }
  0x2d   :  { %617 = vrcp.f32 %v86_v22 }
  0x2e   :  { %619 = vrcp.f32 %v46_v21 }
  0x37   :  { %v618_v25 = vpop.eup %617 }
  0x38   :  { %v620_v26 = vpop.eup %619  ;;  %v88_v27 = vmul.f32 %v618_v25, %v84_v23 }
  0x39   :  { %v48_v28 = vmul.f32 %v620_v26, %v577_v24  ;;  %v690_v26 = vmov 683565275  }
  0x3a   :  { %v91_v29 = vadd.f32 1.0, %v88_v27  ;;  %v578_v35 = vadd.f32 -1.0, %v88_v27  ;;  %vm89_vm5 = vcmp.gt.f32.partialorder %v88_v27, 0.41421357 }
  0x3b   :  { %v49_v30 = vsel %vm44_vm4, %v48_v28, %v43_v19  ;;  %v691_v28 = vmov 2475754826  }
  0x3c   :  { %621 = vrcp.f32 %v91_v29  ;;  %v50_v31 = vmul.f32 %v49_v30, %v49_v30 }
  0x3d   :  { %623 = vrsqrt.f32 %v118_v48 }
  0x3e   :  { %v51_v32 = vmul.f32 0.080537446, %v50_v31 }
  0x40   :  { %v52_v33 = vadd.f32 -0.13877685, %v51_v32  ;;  %v693_v32 = vmov 2102212464  }
  0x42   :  { %v53_v34 = vmul.f32 %v52_v33, %v50_v31 }
  0x44   :  { %v54_v36 = vadd.f32 0.19977711, %v53_v34 }
  0x46   :  { %v622_v37 = vpop.eup %621  ;;  %v55_v38 = vmul.f32 %v54_v36, %v50_v31  ;;  %v694_v36 = vmov 920167782  }
  0x47   :  { %v93_v39 = vmul.f32 %v622_v37, %v578_v35  ;;  %v624_v2 = vpop.eup %623 }
  0x48   :  { %v56_v40 = vadd.f32 -0.3333295, %v55_v38  ;;  %v120_v7 = vmul.f32 %v624_v2, %v118_v48 }
  0x49   :  { %v94_v41 = vsel %vm89_vm5, %v93_v39, %v88_v27 }
  0x4a   :  { %v95_v42 = vmul.f32 %v94_v41, %v94_v41  ;;  %v57_v44 = vmul.f32 %v56_v40, %v50_v31  ;;  %v122_v16 = vsel %vm121_vm10, %v118_v48, %v120_v7  ;;  %v695_v40 = vmov 1326507024  }
  0x4b   :  { %v125_v22 = vsel %vm123_vm12, %v124_v13, %v122_v16 }
  0x4c   :  { %v96_v45 = vmul.f32 0.080537446, %v95_v42  ;;  %v58_v46 = vmul.f32 %v57_v44, %v49_v30 }
  0x4e   :  { %v97_v47 = vadd.f32 -0.13877685, %v96_v45  ;;  %v59_v49 = vadd.f32 %v58_v46, %v49_v30  ;;  %v692_v30 = vmov 2131351028  }
  0x50   :  { %v98_v50 = vmul.f32 %v97_v47, %v95_v42  ;;  %v60_v51 = vadd.f32 0.7853982, %v59_v49 }
  0x52   :  { %v99_v52 = vadd.f32 0.19977711, %v98_v50  ;;  %v61_v53 = vsel %vm44_vm4, %v60_v51, %v59_v49 }
  0x53   :  { %v63_v54 = vsub.f32 1.5707964, %v61_v53 }
  0x54   :  { %v100_v55 = vmul.f32 %v99_v52, %v95_v42 }
  0x55   :  { %v64_v56 = vsel %vm62_vm6, %v63_v54, %v61_v53 }
  0x56   :  { %v101_v57 = vadd.f32 -0.3333295, %v100_v55  ;;  %v66_v58 = vsub.f32 3.1415927, %v64_v56 }
  0x58   :  { %v102_v59 = vmul.f32 %v101_v57, %v95_v42  ;;  %v67_v60 = vsel %vm65_vm7, %v66_v58, %v64_v56 }
  0x59   :  { %v69_v61 = vsub.f32 0.0, %v67_v60 }
  0x5a   :  { %v103_v62 = vmul.f32 %v102_v59, %v94_v41 }
  0x5b   :  { %v766_v63 = vsel %vm68_vm8, %v69_v61, %v67_v60 }
  0x5c   :  { %v104_v3 = vadd.f32 %v103_v62, %v94_v41  ;;  %v343_v6 = vand.u32 2139095040, %v766_v63  ;;  %v340_v0 = vand.u32 2147483647, %v766_v63  ;;  %vm342_vm12 = vcmp.lt.s32.totalorder %v766_v63, 0 }
  0x5e   :  { %v105_v4 = vadd.f32 0.7853982, %v104_v3  ;;  %v344_v5 = vshrl.u32 %v343_v6, 23  ;;  %v347_v19 = vand.u32 8388607, %v340_v0 }
  0x60   :  { %v106_v8 = vsel %vm89_vm5, %v105_v4, %v104_v3  ;;  %v587_v9 = vadd.s32 4294967169, %v344_v5  ;;  %v348_v23 = vor.u32 8388608, %v347_v19 }
  0x61   :  { %v108_v1 = vsub.f32 1.5707964, %v106_v8 }
  0x62   :  { %v350_v11 = vadd.s32 1, %v587_v9  ;;  %v788_v45 = vshll.u32 %v348_v23, 8 }
  0x63   :  { %v109_v12 = vsel %vm107_vm9, %v108_v1, %v106_v8  ;;  %v29_v8 = vld [vmem:[#allocation2 + $0x18] sm:$0xff] }
  0x64   :  { %v111_v14 = vsub.f32 3.1415927, %v109_v12  ;;  %vm351_vm13 = vcmp.gt.s32.totalorder %v350_v11, 0  ;;  %v30_v16 = vmax.f32 %v29_v8, 1.0 }
  0x65   :  { %v352_v20 = vsel %vm351_vm13, %v350_v11, 0  ;;  %vm341_vm13 = vcmp.le.f32.partialorder %v340_v0, 0.7853982 }
  0x66   :  { %v112_v21 = vsel %vm110_vm11, %v111_v14, %v109_v12  ;;  %v354_v15 = vand.u32 31, %v352_v20  ;;  %v353_v24 = vshrl.u32 %v352_v20, 5 }
  0x67   :  { %v114_v18 = vsub.f32 0.0, %v112_v21 }
  0x68   :  { %v355_v25 = vsub.s32 32, %v354_v15  ;;  %v357_v17 = vshll.u32 %v690_v26, %v354_v15  ;;  %v360_v29 = vshll.u32 %v691_v28, %v354_v15  ;;  %v363_v31 = vshll.u32 %v692_v30, %v354_v15 }
  0x69   :  { %v115_v27 = vsel %vm113_vm14, %v114_v18, %v112_v21  ;;  %v366_v33 = vshll.u32 %v693_v32, %v354_v15  ;;  %v369_v37 = vshll.u32 %v694_v36, %v354_v15  ;;  %vm372_vm15 = vcmp.lt.s32.totalorder %v353_v24, 1 }
  0x6a   :  { %v781_v10 = vmul.f32 %v125_v22, %v115_v27  ;;  %v358_v34 = vshrl.u32 %v691_v28, %v355_v25  ;;  %v361_v35 = vshrl.u32 %v692_v30, %v355_v25  ;;  %v364_v38 = vshrl.u32 %v693_v32, %v355_v25 }
  0x6b   :  { %v367_v39 = vshrl.u32 %v694_v36, %v355_v25  ;;  %v370_v41 = vshrl.u32 %v695_v40, %v355_v25  ;;  %v356_v52 = vshrl.u32 %v690_v26, %v355_v25  ;;  %vm373_vm0 = vcmp.lt.s32.totalorder %v353_v24, 2 }
  0x6c   :  { %v133_v42 = vand.u32 2147483647, %v781_v10  ;;  %v136_v44 = vand.u32 2139095040, %v781_v10  ;;  %v359_v46 = vor.u32 %v358_v34, %v357_v17  ;;  %v362_v47 = vor.u32 %v361_v35, %v360_v29 }
  0x6d   :  { %v365_v48 = vor.u32 %v364_v38, %v363_v31  ;;  %v368_v49 = vor.u32 %v367_v39, %v366_v33  ;;  %v371_v53 = vor.u32 %v370_v41, %v369_v37  ;;  %vm374_vm1 = vcmp.lt.s32.totalorder %v353_v24, 3 }
  0x6e   :  { %v137_v50 = vshrl.u32 %v136_v44, 23  ;;  %v140_v51 = vand.u32 8388607, %v133_v42  ;;  %vm375_vm2 = vcmp.lt.s32.totalorder %v353_v24, 4  ;;  %v380_v54 = vsel %vm372_vm15, %v359_v46, %v362_v47 }
  0x6f   :  { %v377_v56 = vsel %vm375_vm2, %v365_v48, 2102212464  ;;  %v381_v57 = vsel %vm375_vm2, %v368_v49, 920167782  ;;  %v384_v59 = vsel %vm372_vm15, %v362_v47, %v365_v48  ;;  %v385_v60 = vsel %vm375_vm2, %v371_v53, 1326507024 }
  0x70   :  { %v579_v55 = vadd.s32 4294967169, %v137_v50  ;;  %v382_v58 = vsel %vm374_vm1, %v365_v48, %v381_v57  ;;  %v141_v61 = vor.u32 8388608, %v140_v51  ;;  %v376_v2 = vsel %vm372_vm15, %v356_v52, %v359_v46 }
  0x71   :  { %v383_v3 = vsel %vm373_vm0, %v380_v54, %v382_v58  ;;  %v378_v6 = vsel %vm374_vm1, %v362_v47, %v377_v56  ;;  %v386_v4 = vsel %vm374_vm1, %v368_v49, %v385_v60  ;;  %v31_v57 = vmin.f32 %v30_v16, 20.0 }
  0x72   :  { %v143_v62 = vadd.s32 1, %v579_v55  ;;  %v798_v5 = vmul.u32.u64.low %v788_v45, %v383_v3  ;;  %v799_v7 = vmul.u32.u64.high %v788_v45, %v383_v3, %v798_v5  ;;  %v387_v9 = vsel %vm373_vm0, %v384_v59, %v386_v4 }
  0x73   :  { %v804_v11 = vmul.u32.u64.low %v788_v45, %v387_v9  ;;  %v805_v12 = vmul.u32.u64.high %v788_v45, %v387_v9, %v804_v11  ;;  %v379_v14 = vsel %vm373_vm0, %v376_v2, %v378_v6  ;;  %v181_v20 = vshll.u32 %v141_v61, 8 }
  0x74   :  { %vm144_vm3 = vcmp.gt.s32.totalorder %v143_v62, 0  ;;  %v395_v17 = vmul.u32 %v788_v45, %v379_v14  ;;  %v398_v27 = vadd.s32 1, %v799_v7  ;;  %vm135_vm14 = vcmp.lt.s32.totalorder %v781_v10, 0 }
  0x75   :  { %v145_v1 = vsel %vm144_vm3, %v143_v62, 0  ;;  %vm397_vm8 = vc.u32 %v805_v12, %v798_v5  ;;  %v32_v62 = vmul.f32 %v31_v57, %v31_v57  ;;  %vm134_vm15 = vcmp.le.f32.partialorder %v133_v42, 0.7853982 }
  0x76   :  { %v147_v13 = vand.u32 31, %v145_v1  ;;  %v146_v19 = vshrl.u32 %v145_v1, 5 }
  0x78   :  { %v148_v21 = vsub.s32 32, %v147_v13  ;;  %v150_v15 = vshll.u32 %v690_v26, %v147_v13  ;;  %v153_v18 = vshll.u32 %v691_v28, %v147_v13  ;;  %v156_v22 = vshll.u32 %v692_v30, %v147_v13 }
  0x79   :  { %v159_v23 = vshll.u32 %v693_v32, %v147_v13  ;;  %v162_v25 = vshll.u32 %v694_v36, %v147_v13  ;;  %vm165_vm4 = vcmp.lt.s32.totalorder %v146_v19, 1  ;;  %vm166_vm5 = vcmp.lt.s32.totalorder %v146_v19, 2 }
  0x7a   :  { %v149_v24 = vshrl.u32 %v690_v26, %v148_v21  ;;  %v151_v29 = vshrl.u32 %v691_v28, %v148_v21  ;;  %v154_v31 = vshrl.u32 %v692_v30, %v148_v21  ;;  %v157_v33 = vshrl.u32 %v693_v32, %v148_v21 }
  0x7b   :  { %v160_v34 = vshrl.u32 %v694_v36, %v148_v21  ;;  %v163_v35 = vshrl.u32 %v695_v40, %v148_v21  ;;  %vm168_vm6 = vcmp.lt.s32.totalorder %v146_v19, 4  ;;  %vm167_vm7 = vcmp.lt.s32.totalorder %v146_v19, 3 }
  0x7c   :  { %v152_v37 = vor.u32 %v151_v29, %v150_v15  ;;  %v155_v38 = vor.u32 %v154_v31, %v153_v18  ;;  %v158_v39 = vor.u32 %v157_v33, %v156_v22  ;;  %v399_v40 = vsel %vm397_vm8, %v398_v27, %v799_v7 }
  0x7d   :  { %v161_v41 = vor.u32 %v160_v34, %v159_v23  ;;  %v164_v44 = vor.u32 %v163_v35, %v162_v25  ;;  %v400_v49 = vadd.s32 %v399_v40, %v395_v17  ;;  %v33_v7 = vadd.f32 1e-08, %v32_v62 }
  0x7e   :  { %v169_v26 = vsel %vm165_vm4, %v149_v24, %v152_v37  ;;  %v170_v28 = vsel %vm168_vm6, %v158_v39, 2102212464  ;;  %v173_v45 = vsel %vm165_vm4, %v152_v37, %v155_v38  ;;  %v177_v30 = vsel %vm165_vm4, %v155_v38, %v158_v39 }
  0x7f   :  { %v171_v46 = vsel %vm167_vm7, %v155_v38, %v170_v28  ;;  %v174_v32 = vsel %vm168_vm6, %v161_v41, 920167782  ;;  %v178_v36 = vsel %vm168_vm6, %v164_v44, 1326507024  ;;  %v401_v58 = vadd.s32 536870912, %v400_v49 }
  0x80   :  { %v175_v47 = vsel %vm167_vm7, %v158_v39, %v174_v32  ;;  %v179_v48 = vsel %vm167_vm7, %v161_v41, %v178_v36  ;;  %v172_v50 = vsel %vm166_vm5, %v169_v26, %v171_v46  ;;  %625 = vrcp.f32 %v33_v7 }
  0x81   :  { %v176_v51 = vsel %vm166_vm5, %v173_v45, %v175_v47  ;;  %v180_v52 = vsel %vm166_vm5, %v177_v30, %v179_v48  ;;  %v188_v59 = vmul.u32 %v181_v20, %v172_v50  ;;  %v402_v60 = vshrl.u32 %v401_v58, 30 }
  0x82   :  { %v824_v53 = vmul.u32.u64.low %v181_v20, %v180_v52  ;;  %v825_v54 = vmul.u32.u64.high %v181_v20, %v180_v52, %v824_v53  ;;  %v827_v55 = vmul.u32.u64.low %v181_v20, %v176_v51  ;;  %v828_v56 = vmul.u32.u64.high %v181_v20, %v176_v51, %v827_v55 }
  0x83   :  { %v403_v2 = vshll.u32 %v402_v60, 30  ;;  %v396_v21 = vadd.s32 %v798_v5, %v805_v12  ;;  %v117_v17 = vmul.f32 %v758_v43, %v758_v43  ;;  %v426_v30 = vsub.s32 4, %v402_v60 }
  0x84   :  { %vm190_vm9 = vc.u32 %v825_v54, %v827_v55  ;;  %v191_v61 = vadd.s32 1, %v828_v56  ;;  %v189_v38 = vadd.s32 %v827_v55, %v825_v54  ;;  %vm432_vm4 = vweird.f32 %v766_v63 }
  0x85   :  { %v404_v4 = vsub.s32 %v400_v49, %v403_v2  ;;  %v130_v37 = vsub.f32 0.0, %v117_v17  ;;  %v427_v51 = vsel %vm342_vm12, %v426_v30, %v402_v60 }
  0x86   :  { %v192_v3 = vsel %vm190_vm9, %v191_v61, %v828_v56  ;;  %v429_v58 = vsel %vm341_vm13, 0, %v427_v51 }
  0x87   :  { %v193_v6 = vadd.s32 %v192_v3, %v188_v59  ;;  %v406_v9 = vsub.s32 0, %v404_v4  ;;  %v131_v46 = vmul.f32 1.442695, %v130_v37  ;;  %v433_v61 = vadd.s32 3, %v429_v58 }
  0x89   :  { %v194_v8 = vadd.s32 536870912, %v193_v6  ;;  %v588_v11 = vmin.u32 %v406_v9, %v404_v4  ;;  %627 = vpow2.f32 %v131_v46 }
  0x8a   :  { %v626_v31 = vpop.eup %625 }
  0x8b   :  { %v833_v1 = vshrl.u32 %v194_v8, 30  ;;  %v408_v14 = vclz %v588_v11  ;;  %v127_v5 = vmul.f32 -0.5, %v626_v31 }
  0x8d   :  { %v196_v13 = vshll.u32 %v833_v1, 30  ;;  %v589_v19 = vadd.s32 4294967294, %v408_v14  ;;  %v128_v40 = vmul.f32 1.442695, %v127_v5  ;;  %v219_v56 = vsub.s32 4, %v833_v1 }
  0x8f   :  { %v197_v16 = vsub.s32 %v193_v6, %v196_v13  ;;  %vm590_vm10 = vcmp.lt.s32.totalorder %v589_v19, 0  ;;  %629 = vpow2.f32 %v128_v40  ;;  %v220_v60 = vsel %vm135_vm14, %v219_v56, %v833_v1 }
  0x90   :  { %v411_v15 = vsel %vm590_vm10, 0, %v589_v19  ;;  %v222_v3 = vsel %vm134_vm15, 0, %v220_v60  ;;  %v434_v6 = vand.u32 3, %v433_v61 }
  0x91   :  { %v199_v20 = vsub.s32 0, %v197_v16  ;;  %v412_v22 = vsub.s32 32, %v411_v15  ;;  %v413_v23 = vshll.u32 %v404_v4, %v411_v15  ;;  %v416_v25 = vsub.s32 4294967266, %v411_v15 }
  0x92   :  { %v537_v4 = vand.u32 3, %v429_v58  ;;  %v226_v9 = vadd.s32 3, %v222_v3  ;;  %vm439_vm0 = vcmp.eq.s32.totalorder %v434_v6, 2  ;;  %vm436_vm2 = vcmp.eq.s32.totalorder %v434_v6, 0 }
  0x93   :  { %v580_v18 = vmin.u32 %v199_v20, %v197_v16  ;;  %v414_v24 = vshrl.u32 %v396_v21, %v412_v22  ;;  %v417_v29 = vadd.s32 127, %v416_v25  ;;  %v628_v7 = vpop.eup %627  ;;  %vm435_vm5 = vcmp.lt.s32.totalorder %v434_v6, 2 }
  0x94   :  { %vm542_vm1 = vcmp.eq.s32.totalorder %v537_v4, 2  ;;  %vm539_vm3 = vcmp.eq.s32.totalorder %v537_v4, 0  ;;  %vm538_vm6 = vcmp.lt.s32.totalorder %v537_v4, 2  ;;  %v330_v19 = vand.u32 3, %v222_v3 }
  0x95   :  { %v201_v27 = vclz %v580_v18  ;;  %v415_v34 = vor.u32 %v414_v24, %v413_v23  ;;  %v418_v35 = vshll.u32 %v417_v29, 23 }
  0x96   :  { %vm335_vm8 = vcmp.eq.s32.totalorder %v330_v19, 2  ;;  %vm332_vm10 = vcmp.eq.s32.totalorder %v330_v19, 0 }
  0x97   :  { %v581_v33 = vadd.s32 4294967294, %v201_v27  ;;  %v419_v39 = vor.u32 4788187, %v418_v35  ;;  %v422_v41 = vcvt.s32.f32 %v415_v34 }
  0x99   :  { %vm582_vm11 = vcmp.lt.s32.totalorder %v581_v33, 0  ;;  %v420_v45 = vand.u32 2147483647, %v419_v39  ;;  %v630_v8 = vpop.eup %629 }
  0x9a   :  { %v204_v12 = vsel %vm582_vm11, 0, %v581_v33  ;;  %v553_v14 = vmul.f32 %v630_v8, %v628_v7  ;;  %v547_v35 = vmul.f32 %v630_v8, %v758_v43 }
  0x9b   :  { %v205_v44 = vsub.s32 32, %v204_v12  ;;  %v206_v26 = vshll.u32 %v197_v16, %v204_v12  ;;  %v209_v28 = vsub.s32 4294967266, %v204_v12  ;;  %v423_v47 = vmul.f32 %v422_v41, %v420_v45 }
  0x9c   :  { %v227_v16 = vand.u32 3, %v226_v9 }
  0x9d   :  { %v207_v32 = vshrl.u32 %v189_v38, %v205_v44  ;;  %v210_v36 = vadd.s32 127, %v209_v28  ;;  %v424_v50 = vxor.u32 2147483648, %v423_v47 }
  0x9e   :  { %vm232_vm7 = vcmp.eq.s32.totalorder %v227_v16, 2  ;;  %vm229_vm9 = vcmp.eq.s32.totalorder %v227_v16, 0  ;;  %vm228_vm11 = vcmp.lt.s32.totalorder %v227_v16, 2 }
  0x9f   :  { %v208_v48 = vor.u32 %v207_v32, %v206_v26  ;;  %v211_v49 = vshll.u32 %v210_v36, 23  ;;  %v425_v54 = vsel %vm342_vm12, %v424_v50, %v423_v47  ;;  %vm331_vm12 = vcmp.lt.s32.totalorder %v330_v19, 2 }
  0xa0   :  { %v428_v57 = vsel %vm341_vm13, %v766_v63, %v425_v54  ;;  %vm225_vm13 = vweird.f32 %v781_v10 }
  0xa1   :  { %v212_v52 = vor.u32 4788187, %v211_v49  ;;  %v215_v53 = vcvt.s32.f32 %v208_v48  ;;  %631 = vcosq.f32 %v428_v57 }
  0xa2   :  { %633 = vsinq.f32 %v428_v57 }
  0xa3   :  { %v213_v55 = vand.u32 2147483647, %v212_v52 }
  0xa5   :  { %v216_v59 = vmul.f32 %v215_v53, %v213_v55 }
  0xa7   :  { %v217_v0 = vxor.u32 2147483648, %v216_v59 }
  0xa9   :  { %v218_v62 = vsel %vm135_vm14, %v217_v0, %v216_v59 }
  0xaa   :  { %v221_v2 = vsel %vm134_vm15, %v781_v10, %v218_v62 }
  0xab   :  { %635 = vcosq.f32 %v221_v2  ;;  %v632_v11 = vpop.eup %631 }
  0xac   :  { %637 = vsinq.f32 %v221_v2  ;;  %v634_v13 = vpop.eup %633  ;;  %v440_v42 = vxor.u32 2147483648, %v632_v11 }
  0xad   :  { %v437_v1 = vxor.u32 2147483648, %v634_v13 }
  0xae   :  { %v441_v20 = vsel %vm439_vm0, %v440_v42, %v634_v13  ;;  %v544_v21 = vsel %vm542_vm1, %v440_v42, %v634_v13 }
  0xaf   :  { %v438_v15 = vsel %vm436_vm2, %v632_v11, %v437_v1  ;;  %v541_v18 = vsel %vm539_vm3, %v632_v11, %v437_v1 }
  0xb0   :  { %v442_v22 = vsel %vm435_vm5, %v438_v15, %v441_v20  ;;  %v545_v23 = vsel %vm538_vm6, %v541_v18, %v544_v21 }
  0xb1   :  { %v443_v25 = vsel %vm432_vm4, nan, %v442_v22  ;;  %v546_v17 = vsel %vm432_vm4, nan, %v545_v23 }
  0xb2   :  { %v554_v24 = vmul.f32 %v553_v14, %v443_v25  ;;  %v557_v29 = vmul.f32 %v553_v14, %v546_v17 }
  0xb4   :  { %556 = vst [vmem:[#allocation5 + $0x10] sm:$0xff] %v554_v24  ;;  %559 = vst [vmem:[#allocation5 + $0x18] sm:$0xff] %v557_v29 }
  0xb5   :  { %v636_v27 = vpop.eup %635 }
  0xb6   :  { %v638_v31 = vpop.eup %637  ;;  %v233_v63 = vxor.u32 2147483648, %v636_v27 }
  0xb7   :  { %v230_v33 = vxor.u32 2147483648, %v638_v31 }
  0xb8   :  { %v234_v34 = vsel %vm232_vm7, %v233_v63, %v638_v31  ;;  %v337_v37 = vsel %vm335_vm8, %v233_v63, %v638_v31 }
  0xb9   :  { %v231_v38 = vsel %vm229_vm9, %v636_v27, %v230_v33  ;;  %v334_v5 = vsel %vm332_vm10, %v636_v27, %v230_v33 }
  0xba   :  { %v235_v12 = vsel %vm228_vm11, %v231_v38, %v234_v34  ;;  %v338_v39 = vsel %vm331_vm12, %v334_v5, %v337_v37 }
  0xbb   :  { %v236_v41 = vsel %vm225_vm13, nan, %v235_v12  ;;  %v339_v44 = vsel %vm225_vm13, nan, %v338_v39 }
  0xbc   :  { %v548_v26 = vmul.f32 %v547_v35, %v236_v41  ;;  %v550_v28 = vmul.f32 %v547_v35, %v339_v44 }
  0xbe   :  { %549 = vst [vmem:[#allocation5] sm:$0xff] %v548_v26  ;;  %552 = vst [vmem:[#allocation5 + $0x8] sm:$0xff] %v550_v28 }
  0xbf   :  { %672 = shalt.err (!%p669_p12)
}
  0xc0   :  { %s673_s24 = scalar_lea.hbm %s870_s1, 512 }
  0xc1   :  { %p674_p13 = scmp.ne.s32.totalorder %s870_s1, %s673_s24  ;;  %p677_p0 = scmp.lt.u32.totalorder %s673_s24, %s870_s1 }
  0xc3   :  { %p679_p1 = pnand %p677_p0, %p674_p13 }
  0xc5   :  { %682 = shalt.err (!%p679_p1)
}
  0xc6   :  { %571 = dma.vmem_to_hbm [thread:$0]  %s566_s20, 512, %s870_s1, [#allocation4], %s688_s16, %s688_s16, %s689_s17  }
  0xc7   :  { %685 = dma.done.wait [#allocation4], 512  }
  0xc8   :  { %686 = vsyncadd [#allocation4], 4294966784 }
  0xc9   :  { %575 = vsyncpa [#allocation3], 1 }
  0xca   :  { %576 = vsyncpa [#allocation4], 1 }

</bundles_post_ra>
